<compile_context>
chip_gen: v7x
topology: tpu7x:2x2x1
jax: 0.10.0
libtpu: 0.0.40
codegen_flags: <defaults>
</compile_context>

<pallas_src>
import functools

import jax
import jax.numpy as jnp
from jax.experimental import pallas as pl
from jax.experimental.pallas import tpu as pltpu


_MIN_ROWS_PER_SPLIT = 512  # only split small-M work across 2 steps if each step gets >= this


def _round_up(x, m):
    return ((x + m - 1) // m) * m


def _mlp_kernel(x_ref, w0_ref, b0_ref, w1_ref, b1_ref, o_ref):
    # matmul (bf16 MXU) -> bias (f32) -> relu (f32) -> matmul (bf16 MXU) -> bias (f32)
    x = x_ref[...].astype(jnp.bfloat16)
    h = jnp.dot(x, w0_ref[...], preferred_element_type=jnp.float32)
    h = jnp.maximum(h + b0_ref[...], 0.0)          # (TM, H) + (1, H) VPU broadcast add, f32
    o = jnp.dot(h.astype(jnp.bfloat16), w1_ref[...],
                preferred_element_type=jnp.float32)
    o_ref[...] = (o + b1_ref[...]).astype(o_ref.dtype)


def decompressor_forward(x, w0, b0, w1, b1, *, tile_m=2048, single_buffer_weights=False):
    """x: (B, W, input_size). w0: (input_size, hidden). w1: (hidden, output_size)."""
    nbatch, nwindow = x.shape[:2]
    x2d = x.reshape(nbatch * nwindow, -1)
    M, K = x2d.shape
    H = w0.shape[1]
    N = w1.shape[1]

    # One-time bf16 cast of the (small, resident) weights; biases stay f32 and
    # are added to the f32 accumulator.
    w0_bf = w0.astype(jnp.bfloat16)
    w1_bf = w1.astype(jnp.bfloat16)
    b0_2d = b0.reshape(1, H).astype(jnp.float32)
    b1_2d = b1.reshape(1, N).astype(jnp.float32)

    # ---- Row tiling (x input stays f32, so 8-row sublane granularity applies).
    tile_m = max(8, _round_up(tile_m, 8))
    if M > tile_m:
        tm = tile_m
    elif M >= 2 * _MIN_ROWS_PER_SPLIT:
        # Mid-sized M: force 2 grid steps so both v7x TensorCores get work.
        tm = _round_up(-(-M // 2), 8)
    else:
        # Small M: single grid step covering all rows.
        tm = _round_up(M, 8)

    m_pad = _round_up(M, tm)
    if m_pad != M:
        # Fallback only for ragged M (never hit in the demo / when M <= tile_m
        # and M % 8 == 0). Padded rows compute bias-only garbage, sliced below.
        x2d = jnp.pad(x2d, ((0, m_pad - M), (0, 0)))
    grid = (m_pad // tm,)

    def resident_spec(block_shape):
        # Constant index_map => the pipeline fetches these blocks once.
        if single_buffer_weights:
            return pl.BlockSpec(block_shape, lambda i: (0, 0),
                                pipeline_mode=pl.Buffered(1))
        return pl.BlockSpec(block_shape, lambda i: (0, 0))

    out2d = pl.pallas_call(
        _mlp_kernel,
        out_shape=jax.ShapeDtypeStruct((m_pad, N), x.dtype),
        grid_spec=pltpu.PrefetchScalarGridSpec(
            num_scalar_prefetch=0,
            grid=grid,
            in_specs=[
                pl.BlockSpec((tm, K), lambda i: (i, 0)),   # x row tile (streamed)
                resident_spec((K, H)),                     # W0 (bf16, resident)
                resident_spec((1, H)),                     # b0 (f32, resident)
                resident_spec((H, N)),                     # W1 (bf16, resident)
                resident_spec((1, N)),                     # b1 (f32, resident)
            ],
            out_specs=pl.BlockSpec((tm, N), lambda i: (i, 0)),
        ),
        compiler_params=pltpu.CompilerParams(
            # Row-tile steps are independent -> shard across v7x TensorCores.
            dimension_semantics=("parallel",),
        ),
    )(x2d, w0_bf, b0_2d, w1_bf, b1_2d)

    if m_pad != M:
        out2d = out2d[:M]
    return out2d.reshape(nbatch, nwindow, N)


def _reference(x, w0, b0, w1, b1):
    nbatch, nwindow = x.shape[:2]
    x2d = x.reshape(nbatch * nwindow, -1)
    h = jnp.maximum(x2d @ w0 + b0, 0.0)
    o = h @ w1 + b1
    return o.reshape(nbatch, nwindow, -1)


if __name__ == "__main__":
    # Small shapes consistent with the module's forward (hidden_size = module default 512).
    nbatch, nwindow = 2, 8
    input_size, hidden_size, output_size = 32, 512, 64

    key = jax.random.PRNGKey(0)
    kx, kw0, kb0, kw1, kb1 = jax.random.split(key, 5)

    x = jax.random.normal(kx, (nbatch, nwindow, input_size), dtype=jnp.float32)

    # Deterministic parameter init (mimics nn.Linear's uniform(-1/sqrt(in), 1/sqrt(in))).
    lim0 = 1.0 / (input_size ** 0.5)
    lim1 = 1.0 / (hidden_size ** 0.5)
    w0 = jax.random.uniform(kw0, (input_size, hidden_size), jnp.float32, -lim0, lim0)
    b0 = jax.random.uniform(kb0, (hidden_size,), jnp.float32, -lim0, lim0)
    w1 = jax.random.uniform(kw1, (hidden_size, output_size), jnp.float32, -lim1, lim1)
    b1 = jax.random.uniform(kb1, (output_size,), jnp.float32, -lim1, lim1)

    fwd = jax.jit(functools.partial(decompressor_forward, tile_m=2048))
    out = fwd(x, w0, b0, w1, b1)
    jax.block_until_ready(out)

    ref = _reference(x, w0, b0, w1, b1)
    assert out.shape == (nbatch, nwindow, output_size)
    # bf16 matmul operands with f32 accumulation -> loosened tolerance vs f32 reference.
    assert jnp.allclose(out, ref, atol=5e-2, rtol=5e-2), "mismatch vs reference"

    print("KERNEL_OK")
</pallas_src>

<mosaic_0001>
module attributes {stable_mosaic.version = 11 : i64} {
  func.func @_mlp_kernel(%arg0: i32, %arg1: memref<16x32xf32, #tpu.memory_space<vmem>>, %arg2: memref<32x512xbf16, #tpu.memory_space<vmem>>, %arg3: memref<1x512xf32, #tpu.memory_space<vmem>>, %arg4: memref<512x64xbf16, #tpu.memory_space<vmem>>, %arg5: memref<1x64xf32, #tpu.memory_space<vmem>>, %arg6: memref<16x64xf32, #tpu.memory_space<vmem>>) attributes {dimension_semantics = [#tpu.dimension_semantics<parallel>], iteration_bounds = array<i64: 1>, scalar_prefetch = 0 : i64, scratch_operands = 0 : i64, tpu.core_type = #tpu.core_type<tc>, window_params = [{transform_indices = @transform_0, window_bounds = array<i64: 16, 32>}, {pipeline_mode = #tpu.pipeline_mode<synchronous>, transform_indices = @transform_1, window_bounds = array<i64: 32, 512>}, {pipeline_mode = #tpu.pipeline_mode<synchronous>, transform_indices = @transform_2, window_bounds = array<i64: 1, 512>}, {pipeline_mode = #tpu.pipeline_mode<synchronous>, transform_indices = @transform_3, window_bounds = array<i64: 512, 64>}, {pipeline_mode = #tpu.pipeline_mode<synchronous>, transform_indices = @transform_4, window_bounds = array<i64: 1, 64>}, {transform_indices = @transform_5, window_bounds = array<i64: 16, 64>}]} {
    %c0 = arith.constant 0 : index
    %c0_0 = arith.constant 0 : index
    %0 = vector.load %arg1[%c0, %c0_0] : memref<16x32xf32, #tpu.memory_space<vmem>>, vector<16x32xf32>
    %1 = arith.truncf %0 : vector<16x32xf32> to vector<16x32xbf16>
    %c0_1 = arith.constant 0 : index
    %c0_2 = arith.constant 0 : index
    %2 = vector.load %arg2[%c0_1, %c0_2] : memref<32x512xbf16, #tpu.memory_space<vmem>>, vector<32x512xbf16>
    %cst = arith.constant dense<0.000000e+00> : vector<16x512xf32>
    %3 = tpu.matmul %1, %2, %cst {dimension_numbers = #tpu.dot_dimension_numbers<[1], [0], [0], [1], [0, 0, 1, 1], [], []>} : vector<16x32xbf16>, vector<32x512xbf16>, vector<16x512xf32> -> vector<16x512xf32>
    %c0_3 = arith.constant 0 : index
    %c0_4 = arith.constant 0 : index
    %4 = vector.load %arg3[%c0_3, %c0_4] : memref<1x512xf32, #tpu.memory_space<vmem>>, vector<1x512xf32>
    %5 = vector.broadcast %4 : vector<1x512xf32> to vector<16x512xf32>
    %6 = arith.addf %3, %5 : vector<16x512xf32>
    %cst_5 = arith.constant 0.000000e+00 : f32
    %7 = vector.broadcast %cst_5 : f32 to vector<16x512xf32>
    %8 = arith.maximumf %6, %7 : vector<16x512xf32>
    %9 = arith.truncf %8 : vector<16x512xf32> to vector<16x512xbf16>
    %c0_6 = arith.constant 0 : index
    %c0_7 = arith.constant 0 : index
    %10 = vector.load %arg4[%c0_6, %c0_7] : memref<512x64xbf16, #tpu.memory_space<vmem>>, vector<512x64xbf16>
    %cst_8 = arith.constant dense<0.000000e+00> : vector<16x64xf32>
    %11 = tpu.matmul %9, %10, %cst_8 {dimension_numbers = #tpu.dot_dimension_numbers<[1], [0], [0], [1], [0, 0, 1, 1], [], []>} : vector<16x512xbf16>, vector<512x64xbf16>, vector<16x64xf32> -> vector<16x64xf32>
    %c0_9 = arith.constant 0 : index
    %c0_10 = arith.constant 0 : index
    %12 = vector.load %arg5[%c0_9, %c0_10] : memref<1x64xf32, #tpu.memory_space<vmem>>, vector<1x64xf32>
    %13 = vector.broadcast %12 : vector<1x64xf32> to vector<16x64xf32>
    %14 = arith.addf %11, %13 : vector<16x64xf32>
    %c0_11 = arith.constant 0 : index
    %c0_12 = arith.constant 0 : index
    %15 = vector.load %arg6[%c0_11, %c0_12] : memref<16x64xf32, #tpu.memory_space<vmem>>, vector<16x64xf32>
    tpu.vector_store %arg6[%c0_11, %c0_12], %14 {strides = array<i32>} : memref<16x64xf32, #tpu.memory_space<vmem>>, vector<16x64xf32>,
    return
  }
  func.func @transform_0(%arg0: i32) -> (i32, i32) {
    %c0_i32 = arith.constant 0 : i32
    %c0_i32_0 = arith.constant 0 : i32
    return %arg0, %c0_i32 : i32, i32
  }
  func.func @transform_1(%arg0: i32) -> (i32, i32) {
    %c0_i32 = arith.constant 0 : i32
    %c0_i32_0 = arith.constant 0 : i32
    %c0_i32_1 = arith.constant 0 : i32
    return %c0_i32, %c0_i32_0 : i32, i32
  }
  func.func @transform_2(%arg0: i32) -> (i32, i32) {
    %c0_i32 = arith.constant 0 : i32
    %c0_i32_0 = arith.constant 0 : i32
    %c0_i32_1 = arith.constant 0 : i32
    return %c0_i32, %c0_i32_0 : i32, i32
  }
  func.func @transform_3(%arg0: i32) -> (i32, i32) {
    %c0_i32 = arith.constant 0 : i32
    %c0_i32_0 = arith.constant 0 : i32
    %c0_i32_1 = arith.constant 0 : i32
    return %c0_i32, %c0_i32_0 : i32, i32
  }
  func.func @transform_4(%arg0: i32) -> (i32, i32) {
    %c0_i32 = arith.constant 0 : i32
    %c0_i32_0 = arith.constant 0 : i32
    %c0_i32_1 = arith.constant 0 : i32
    return %c0_i32, %c0_i32_0 : i32, i32
  }
  func.func @transform_5(%arg0: i32) -> (i32, i32) {
    %c0_i32 = arith.constant 0 : i32
    %c0_i32_0 = arith.constant 0 : i32
    return %arg0, %c0_i32 : i32, i32
  }
}

</mosaic_0001>

<bundles_post_ra>
// kernel: decompressor_forward.1
= control target key start
LH: loop header
LB: loop body
LE: loop exit
PB: predicated region body
PF: predicated region fallthrough
CT: control target
= control target key end

     0   :  { %v720_v2 = vmov 0   ;;  %vm95_vm0 = vcmask 261120   ;;  %s898_s0 = inlined_call_operand.vmem [shape: f32[16,32], index: 0, kind: input, shape index: {}]   ;;  %s899_s1 = inlined_call_operand.vmem [shape: bf16[32,512], index: 1, kind: input, shape index: {}]   ;;  %s900_s2 = inlined_call_operand.vmem [shape: f32[1,512], index: 2, kind: input, shape index: {}]   ;;  %s901_s3 = inlined_call_operand.vmem [shape: bf16[512,64], index: 3, kind: input, shape index: {}]   ;;  %s902_s4 = inlined_call_operand.vmem [shape: f32[1,64], index: 4, kind: input, shape index: {}]   ;;  %s903_s5 = inlined_call_operand.hbm [shape: f32[16,64], index: 5, kind: output, shape index: {}]  }
   0x1   :  { %v652_v0 = vld [vmem:[%s899_s1 + $0x4] ss:$16 sps:$4 sm:$0xff]   ;;  %v654_v1 = vld [vmem:[%s899_s1 + $0xc] ss:$16 sps:$4 sm:$0xff]   ;;  %131 = vmatprep.mubr.bf16.mxu0 %v720_v2  ;;  %174 = vmatprep.mubr.bf16.mxu1 %v720_v2  ;;  %v656_v3 = vld [vmem:[%s899_s1] ss:$16 sps:$4 sm:$0xff]  }
   0x2   :  { %99 = vmatprep.subr.bf16.mxu0 %v652_v0  ;;  %v657_v4 = vld [vmem:[%s899_s1 + $0x8] ss:$16 sps:$4 sm:$0xff]   ;;  %142 = vmatprep.subr.bf16.mxu1 %v654_v1  ;;  %v658_v5 = vld [vmem:[%s899_s1 + $0x24] ss:$16 sps:$4 sm:$0xff]   ;;  %v660_v6 = vld [vmem:[%s899_s1 + $0x2c] ss:$16 sps:$4 sm:$0xff]  }
   0x3   :  { %100 = vmatpush1.bf16.msra.mxu0 %v656_v3  ;;  %143 = vmatpush1.bf16.msra.mxu1 %v657_v4  ;;  %v662_v7 = vld [vmem:[%s899_s1 + $0x20] ss:$16 sps:$4 sm:$0xff]   ;;  %v663_v8 = vld [vmem:[%s899_s1 + $0x28] ss:$16 sps:$4 sm:$0xff]  }
   0x4   :  { %101 = vmatprep.subr.bf16.mxu0 %v658_v5  ;;  %v22_v9 = vld [vmem:[%s898_s0] sm:$0xff]  ;;  %v23_v10 = vld [vmem:[%s898_s0 + $0x8] sm:$0xff]  ;;  %144 = vmatprep.subr.bf16.mxu1 %v660_v6  ;;  %v672_v20 = vld [vmem:[%s901_s3 + $0x50] sm:$0xff]  }
   0x5   :  { %v664_v11 = vld [vmem:[%s901_s3 + $0x40] sm:$0xff]   ;;  %v24_v12 = vpack.c.bf16 %v23_v10, %v22_v9  ;;  %v668_v16 = vld [vmem:[%s901_s3 + $0x48] sm:$0xff]   ;;  %v673_v21 = vld [vmem:[%s901_s3 + $0xd0] sm:$0xff]  }
   0x6   :  { %v665_v13 = vld [vmem:[%s901_s3 + $0xc0] sm:$0xff]   ;;  %v669_v17 = vld [vmem:[%s901_s3 + $0xc8] sm:$0xff]   ;;  %v674_v22 = vld [vmem:[%s901_s3 + $0x10] sm:$0xff]  }
   0x7   :  { %102 = vmatpush1.bf16.msra.mxu0 %v662_v7  ;;  %145 = vmatpush1.bf16.msra.mxu1 %v663_v8  ;;  %v666_v14 = vld [vmem:[%s901_s3] sm:$0xff]   ;;  %v670_v18 = vld [vmem:[%s901_s3 + $0x8] sm:$0xff]   ;;  %v675_v23 = vld [vmem:[%s901_s3 + $0x90] sm:$0xff]  }
   0x8   :  { %604 = vmatprep.subr.bf16.mxu0 %v664_v11  ;;  %626 = vmatprep.subr.bf16.mxu1 %v665_v13  ;;  %v667_v15 = vld [vmem:[%s901_s3 + $0x80] sm:$0xff]   ;;  %v671_v19 = vld [vmem:[%s901_s3 + $0x88] sm:$0xff]   ;;  %v676_v24 = vld [vmem:[%s901_s3 + $0x58] sm:$0xff]  }
   0x9   :  { %v677_v25 = vld [vmem:[%s901_s3 + $0xd8] sm:$0xff]   ;;  %v680_v28 = vld [vmem:[%s901_s3 + $0x60] sm:$0xff]   ;;  %v684_v32 = vld [vmem:[%s901_s3 + $0x68] sm:$0xff]  }
   0xa   :  { %569 = vmatmul.mubr.msk.bf16.vlgmr.msra.gmra.mrb[0].mxu0 %vm95_vm0, %v24_v12  ;;  %570 = vmatmul.mubr.msk.bf16.vlgmr.msra.gmra.mrb[0].mxu1 %vm95_vm0, %v24_v12  ;;  %v678_v26 = vld [vmem:[%s901_s3 + $0x18] sm:$0xff]   ;;  %v681_v29 = vld [vmem:[%s901_s3 + $0xe0] sm:$0xff]   ;;  %v685_v33 = vld [vmem:[%s901_s3 + $0xe8] sm:$0xff]  }
   0xb   :  { %605 = vmatpush3.bf16.msra.mxu0 %v666_v14  ;;  %627 = vmatpush3.bf16.msra.mxu1 %v667_v15  ;;  %v679_v27 = vld [vmem:[%s901_s3 + $0x98] sm:$0xff]   ;;  %v682_v30 = vld [vmem:[%s901_s3 + $0x20] sm:$0xff]  }
   0xc   :  { %606 = vmatprep.subr.bf16.mxu0 %v668_v16  ;;  %628 = vmatprep.subr.bf16.mxu1 %v669_v17  ;;  %v683_v31 = vld [vmem:[%s901_s3 + $0xa0] sm:$0xff]  }
   0xf   :  { %607 = vmatpush3.bf16.msra.mxu0 %v670_v18  ;;  %629 = vmatpush3.bf16.msra.mxu1 %v671_v19 }
  0x10   :  { %608 = vmatprep.subr.bf16.mxu0 %v672_v20  ;;  %630 = vmatprep.subr.bf16.mxu1 %v673_v21 }
  0x13   :  { %609 = vmatpush3.bf16.msra.mxu0 %v674_v22  ;;  %631 = vmatpush3.bf16.msra.mxu1 %v675_v23 }
  0x14   :  { %610 = vmatprep.subr.bf16.mxu0 %v676_v24  ;;  %632 = vmatprep.subr.bf16.mxu1 %v677_v25 }
  0x17   :  { %611 = vmatpush3.bf16.msra.mxu0 %v678_v26  ;;  %633 = vmatpush3.bf16.msra.mxu1 %v679_v27 }
  0x18   :  { %612 = vmatprep.subr.bf16.mxu0 %v680_v28  ;;  %634 = vmatprep.subr.bf16.mxu1 %v681_v29 }
  0x1b   :  { %613 = vmatpush3.bf16.msra.mxu0 %v682_v30  ;;  %635 = vmatpush3.bf16.msra.mxu1 %v683_v31 }
  0x1c   :  { %614 = vmatprep.subr.bf16.mxu0 %v684_v32  ;;  %636 = vmatprep.subr.bf16.mxu1 %v685_v33 }
  0x1d   :  { %10 = vsyncpa [#allocation3], 0  ;;  %v686_v34 = vld [vmem:[%s901_s3 + $0x28] sm:$0xff]   ;;  %v688_v36 = vld [vmem:[%s901_s3 + $0x70] sm:$0xff]   ;;  %v35_v44 = vlaneseq  ;;  %s721_s23 = smov [#allocation2]   ;;  %vm542_vm1 = vcmask 523264  }
  0x1e   :  { %v687_v35 = vld [vmem:[%s901_s3 + $0xa8] sm:$0xff]   ;;  %v689_v37 = vld [vmem:[%s901_s3 + $0xf0] sm:$0xff]   ;;  %v692_v40 = vld [vmem:[%s901_s3 + $0x78] sm:$0xff]   ;;  %s550_s24 = sshll.u32 %s721_s23, 4  ;;  %s551_s24 = int_to_ptr.vmem [resolvable:$true] %s550_s24 }
  0x1f   :  { %615 = vmatpush3.bf16.msra.mxu0 %v686_v34  ;;  %637 = vmatpush3.bf16.msra.mxu1 %v687_v35  ;;  %v690_v38 = vld [vmem:[%s901_s3 + $0x30] sm:$0xff]   ;;  %v693_v41 = vld [vmem:[%s901_s3 + $0xf8] sm:$0xff]   ;;  %v36_v45 = vshrl.u32 %v35_v44, 7  ;;  %v33_v48 = vld [vmem:[%s900_s2] sm:$0xf]  ;;  %p701_p1 = scmp.lt.s32.totalorder %s551_s24, %s551_s24 }
  0x20   :  { %v691_v39 = vld [vmem:[%s901_s3 + $0xb0] sm:$0xff]   ;;  %616 = vmatprep.subr.bf16.mxu0 %v688_v36  ;;  %638 = vmatprep.subr.bf16.mxu1 %v689_v37  ;;  %v694_v42 = vld [vmem:[%s901_s3 + $0x38] sm:$0xff]   ;;  %v571_v21 = vld [vmem:[%s902_s4] ss:$0 sm:$0xff]  ;;  %s696_s4 = scalar_lea.vmem %s551_s24, 256 }
  0x21   :  { %v695_v43 = vld [vmem:[%s901_s3 + $0xb8] sm:$0xff]   ;;  %v37_v46 = vsub.s32 0, %v36_v45  ;;  %v45_v47 = vsub.s32 2, %v36_v45  ;;  %v41_v49 = vsub.s32 1, %v36_v45  ;;  %v49_v50 = vsub.s32 3, %v36_v45  ;;  %p697_p0 = scmp.ne.s32.totalorder %s551_s24, %s696_s4  ;;  %p702_p2 = scmp.lt.s32.totalorder %s696_s4, %s696_s4 }
  0x23   :  { %617 = vmatpush3.bf16.msra.mxu0 %v690_v38  ;;  %639 = vmatpush3.bf16.msra.mxu1 %v691_v39  ;;  %v38_v51 = vrot.slane %v33_v48, %v37_v46  ;;  %v46_v52 = vrot.slane %v33_v48, %v45_v47  ;;  %v42_v53 = vrot.slane %v33_v48, %v41_v49  ;;  %p703_p3 = por %p702_p2, %p701_p1 }
  0x24   :  { %618 = vmatprep.subr.bf16.mxu0 %v692_v40  ;;  %640 = vmatprep.subr.bf16.mxu1 %v693_v41  ;;  %v50_v54 = vrot.slane %v33_v48, %v49_v50 }
  0x25   :  { %p704_p4 = pnand %p703_p3, %p697_p0 }
  0x27   :  { %619 = vmatpush3.bf16.msra.mxu0 %v694_v42  ;;  %641 = vmatpush3.bf16.msra.mxu1 %v695_v43 }
  0xdd   :  { %v133_v55 = vpop.f32.mrb[0].mxu0  ;;  %v176_v56 = vpop.f32.mrb[0].mxu1 }
  0xde   :  { %v134_v57 = vadd.f32 %v133_v55, %v38_v51  ;;  %v177_v58 = vadd.f32 %v176_v56, %v46_v52  ;;  %v135_v59 = vpop.f32.mrb[1].mxu0  ;;  %v178_v60 = vpop.f32.mrb[1].mxu1 }
  0xdf   :  { %v136_v61 = vadd.f32 %v135_v59, %v42_v53  ;;  %v179_v62 = vadd.f32 %v178_v60, %v50_v54  ;;  %v137_v63 = vpop.f32.mrb[2].mxu0  ;;  %v180_v0 = vpop.f32.mrb[2].mxu1 }
  0xe0   :  { %v187_v1 = vmax.f32 %v177_v58, 0.0  ;;  %v138_v2 = vadd.f32 %v137_v63, %v38_v51  ;;  %v181_v3 = vadd.f32 %v180_v0, %v46_v52  ;;  %v139_v4 = vpop.f32.mrb[3].mxu0  ;;  %v182_v5 = vpop.f32.mrb[3].mxu1  ;;  %v185_v9 = vmax.f32 %v134_v57, 0.0 }
  0xe1   :  { %v188_v6 = vmax.f32 %v179_v62, 0.0  ;;  %v140_v7 = vadd.f32 %v139_v4, %v42_v53  ;;  %v183_v8 = vadd.f32 %v182_v5, %v50_v54  ;;  %v186_v12 = vmax.f32 %v136_v61, 0.0 }
  0xe2   :  { %v189_v10 = vmax.f32 %v138_v2, 0.0  ;;  %v191_v11 = vmax.f32 %v181_v3, 0.0 }
  0xe3   :  { %v190_v13 = vmax.f32 %v140_v7, 0.0  ;;  %v192_v14 = vmax.f32 %v183_v8, 0.0 }
  0xe4   :  { %v193_v15 = vpack.c.bf16 %v189_v10, %v185_v9  ;;  %v195_v16 = vpack.c.bf16 %v191_v11, %v187_v1 }
  0xe5   :  { %v194_v17 = vpack.c.bf16 %v190_v13, %v186_v12  ;;  %v196_v18 = vpack.c.bf16 %v192_v14, %v188_v6 }
  0xe7   :  { %492 = vmatprep.mubr.bf16.mxu0 %v194_v17  ;;  %533 = vmatprep.mubr.bf16.mxu1 %v196_v18 }
  0xe8   :  { %493 = vmatmul.mubr.bf16.vlgmr.msra.gmra.mrb[4].mxu0 %v193_v15  ;;  %534 = vmatmul.mubr.bf16.vlgmr.msra.gmra.mrb[4].mxu1 %v195_v16 }
 0x1bb   :  { %v620_v19 = vpop.f32.mrb[4].mxu0  ;;  %v642_v20 = vpop.f32.mrb[4].mxu1 }
 0x1bc   :  { %v621_v22 = vpop.f32.mrb[5].mxu0  ;;  %v643_v23 = vpop.f32.mrb[5].mxu1 }
 0x1bd   :  { %v622_v24 = vadd.f32 %v621_v22, %v620_v19  ;;  %v644_v25 = vadd.f32 %v643_v23, %v642_v20  ;;  %v623_v26 = vpop.f32.mrb[6].mxu0  ;;  %v645_v27 = vpop.f32.mrb[6].mxu1 }
 0x1be   :  { %v624_v28 = vpop.f32.mrb[7].mxu0  ;;  %v646_v29 = vpop.f32.mrb[7].mxu1 }
 0x1bf   :  { %v495_v30 = vadd.f32 %v622_v24, %v571_v21  ;;  %v625_v31 = vadd.f32 %v624_v28, %v623_v26  ;;  %v647_v32 = vadd.f32 %v646_v29, %v645_v27 }
 0x1c1   :  { %v536_v33 = vadd.f32 %v644_v25, %v495_v30  ;;  %v498_v34 = vadd.f32 %v625_v31, %v571_v21 }
 0x1c3   :  { %543 = vst.msk [vmem:[#allocation2] sm:$0xff] %vm542_vm1, %v536_v33  ;;  %v539_v35 = vadd.f32 %v647_v32, %v498_v34 }
 0x1c5   :  { %544 = vst.msk [vmem:[#allocation2 + $0x8] sm:$0xff] %vm542_vm1, %v539_v35 }
 0x1c6   :  { %707 = shalt.err (!%p704_p4)
}
 0x1c7   :  { %s708_s27 = scalar_lea.hbm %s903_s5, 256 }
 0x1c8   :  { %p709_p5 = scmp.ne.s32.totalorder %s903_s5, %s708_s27  ;;  %p712_p6 = scmp.lt.u32.totalorder %s708_s27, %s903_s5 }
 0x1ca   :  { %p714_p7 = pnand %p712_p6, %p709_p5 }
 0x1cc   :  { %717 = shalt.err (!%p714_p7)
}
 0x1cd   :  { %s722_s7 = smov 128   ;;  %s723_s8 = smov 8  }
 0x1ce   :  { %556 = dma.vmem_to_hbm [thread:$0]  %s551_s24, 256, %s903_s5, [#allocation3], %s722_s7, %s722_s7, %s723_s8  }
 0x1cf   :  { %718 = dma.done.wait [#allocation3], 256  }
 0x1d0   :  { %719 = vsyncadd [#allocation3], 4294967040 }
 0x1d1   :  { %560 = vsyncpa [#allocation3], 1 }

</bundles_post_ra>
